<compile_context>
chip_gen: v7x
topology: tpu7x:2x2x1
jax: 0.10.0
libtpu: 0.0.40
codegen_flags: <defaults>
</compile_context>

<pallas_src>
import numpy as np
import jax
import jax.numpy as jnp
from jax.experimental import pallas as pl
from jax.experimental.pallas import tpu as pltpu


# ----------------------------- kernels --------------------------------------

def _gemm_bias_kernel(p_ref, w_ref, b_ref, o_ref):
    # Single-K-block fast path: one MXU contraction, bias fused, direct store.
    # p_ref: (tm, tk) patches, w_ref: (tk, tn) scale-folded weights,
    # b_ref: (1, tn) bias (f32), o_ref: (tm, tn) lane-dense output.
    acc = jnp.dot(p_ref[...], w_ref[...], preferred_element_type=jnp.float32)
    o_ref[...] = (acc + b_ref[...]).astype(o_ref.dtype)


def _gemm_bias_acc_kernel(p_ref, w_ref, b_ref, o_ref, acc_ref):
    # K-tiled path for deep layers: resident f32 accumulator across the
    # innermost ("arbitrary") K axis, bias fused in the epilogue.
    kk = pl.program_id(2)

    @pl.when(kk == 0)
    def _():
        acc_ref[...] = jnp.zeros_like(acc_ref)

    acc_ref[...] += jnp.dot(p_ref[...], w_ref[...],
                            preferred_element_type=jnp.float32)

    @pl.when(kk == pl.num_programs(2) - 1)
    def _():
        o_ref[...] = (acc_ref[...] + b_ref[...]).astype(o_ref.dtype)


# ----------------------------- helpers --------------------------------------

def _round_up(x, m):
    return ((x + m - 1) // m) * m


def _im2col(x_pad, k, stride, Ho, Wo):
    """(N, Hp, Wp, Cin) -> (N, Ho, Wo, k*k*Cin).  Pure slicing/concat (layout only)."""
    cols = []
    for kh in range(k):
        for kw in range(k):
            cols.append(
                x_pad[:, kh:kh + (Ho - 1) * stride + 1:stride,
                      kw:kw + (Wo - 1) * stride + 1:stride, :])
    return jnp.concatenate(cols, axis=-1)


def _vmem_capacity_bytes():
    """Generation-aware VMEM capacity (128 MiB v5e/v6e, 64 MiB v7x per TC)."""
    try:
        return int(pltpu.get_tpu_info().vmem_capacity_bytes)
    except Exception:
        return 64 * 1024 * 1024  # conservative fallback (v7x-sized)


def _choose_tiles(M, K, Cout_pad, in_bytes, out_bytes, vmem_limit):
    """Pick (tm, tn, tk, K_pad) so the double-buffered working set fits VMEM."""
    tn = min(Cout_pad, 256)                 # 256-wide MXU on v6e/v7x; lane-dense
    tk_max = 1024                           # K-tile for deep layers (multiple of 128)
    if K <= tk_max:
        tk, K_pad = K, K                    # single full-K block, no accumulator
    else:
        tk, K_pad = tk_max, _round_up(K, tk_max)
    num_k = K_pad // tk

    budget = int(vmem_limit * 0.6)          # headroom for compiler scratch
    tm = 256
    for cand in (1024, 768, 512, 256):
        ws = (2 * (cand * tk + tk * tn) * in_bytes      # double-buffered inputs
              + 2 * cand * tn * out_bytes               # double-buffered output
              + 2 * tn * 4                              # bias
              + (cand * tn * 4 if num_k > 1 else 0))    # f32 accumulator scratch
        if ws <= budget:
            tm = cand
            break
    # Keep >= 2 M tiles when there is enough work (both v7x TensorCores busy).
    tm = min(tm, 256 * max(1, _round_up(M, 256) // 256 // 2))
    return tm, tn, tk, K_pad


# ----------------------------- forward --------------------------------------

def equalized_conv2d_forward(x_nchw, weight_oihw, bias, scale, *, stride, pad,
                             compute_dtype=None, out_layout="NCHW"):
    """y = conv2d(x * scale, W, stride, pad) + bias  (NCHW in; NCHW or NHWC out)."""
    N, Cin, H, W = x_nchw.shape
    Cout, _, k, _ = weight_oihw.shape
    Ho = (H + 2 * pad - k) // stride + 1
    Wo = (W + 2 * pad - k) // stride + 1
    K = k * k * Cin
    M = N * Ho * Wo

    cdt = x_nchw.dtype if compute_dtype is None else jnp.dtype(compute_dtype)
    out_dtype = x_nchw.dtype
    in_bytes = jnp.dtype(cdt).itemsize
    out_bytes = jnp.dtype(out_dtype).itemsize

    vmem_cap = _vmem_capacity_bytes()
    vmem_limit = min(vmem_cap * 3 // 4, 112 * 1024 * 1024)  # ~96 MiB v5e/v6e, 48 MiB v7x

    Cout_pad = _round_up(Cout, 128)
    tm, tn, tk, K_pad = _choose_tiles(M, K, Cout_pad, in_bytes, out_bytes, vmem_limit)
    M_pad = _round_up(M, tm)
    num_m, num_j, num_k = M_pad // tm, Cout_pad // tn, K_pad // tk

    # ---- layout plumbing in the wrapper (no conv arithmetic) ----------------
    # (If the surrounding model is NHWC end-to-end, this transpose disappears.)
    x_nhwc = jnp.transpose(x_nchw, (0, 2, 3, 1))
    x_p = jnp.pad(x_nhwc, ((0, 0), (pad, pad), (pad, pad), (0, 0)))
    patches = _im2col(x_p, k, stride, Ho, Wo).reshape(M, K).astype(cdt)

    # Fold the equalized-lr scale into the (tiny) weights.
    w_mat = jnp.transpose(weight_oihw, (2, 3, 1, 0)).reshape(K, Cout)
    w_mat = (w_mat.astype(jnp.float32) * scale).astype(cdt)

    # Zero padding: rows (M), contraction (K), lane-dense output channels (Cout).
    patches = jnp.pad(patches, ((0, M_pad - M), (0, K_pad - K)))
    w_mat = jnp.pad(w_mat, ((0, K_pad - K), (0, Cout_pad - Cout)))
    b_mat = jnp.pad(bias.astype(jnp.float32), (0, Cout_pad - Cout)).reshape(1, Cout_pad)

    grid = (num_m, num_j, num_k)
    in_specs = [
        pl.BlockSpec((tm, tk), lambda i, j, kk: (i, kk)),   # patches: M x K tiled
        pl.BlockSpec((tk, tn), lambda i, j, kk: (kk, j)),   # weights: resident when
        pl.BlockSpec((1, tn), lambda i, j, kk: (0, j)),     #   num_j == num_k == 1
    ]
    out_spec = pl.BlockSpec((tm, tn), lambda i, j, kk: (i, j))
    cparams = pltpu.CompilerParams(
        dimension_semantics=("parallel", "parallel", "arbitrary"),
        vmem_limit_bytes=vmem_limit,
    )
    out_shape = jax.ShapeDtypeStruct((M_pad, Cout_pad), out_dtype)

    if num_k == 1:
        out = pl.pallas_call(
            _gemm_bias_kernel, out_shape=out_shape, grid=grid,
            in_specs=in_specs, out_specs=out_spec, compiler_params=cparams,
        )(patches, w_mat, b_mat)
    else:
        out = pl.pallas_call(
            _gemm_bias_acc_kernel, out_shape=out_shape, grid=grid,
            in_specs=in_specs, out_specs=out_spec,
            scratch_shapes=[pltpu.VMEM((tm, tn), jnp.float32)],
            compiler_params=cparams,
        )(patches, w_mat, b_mat)

    out = out[:M, :Cout].reshape(N, Ho, Wo, Cout)
    if out_layout == "NHWC":
        return out
    return jnp.transpose(out, (0, 3, 1, 2))  # back to NCHW (PyTorch layout)


# ----------------------------- init + self-test -----------------------------

def init_equalized_conv2d(key, c_in, c_out, k_size):
    """Deterministic re-implementation of the module's __init__."""
    fan_in = c_in * k_size * k_size
    std = np.sqrt(2.0 / fan_in)  # kaiming_normal, fan_in mode, a=0
    w_raw = jax.random.normal(key, (c_out, c_in, k_size, k_size),
                              dtype=jnp.float32) * std
    scale = jnp.sqrt(jnp.mean(w_raw ** 2))      # self.scale
    w_norm = w_raw / scale                      # addcdiv(0, 1, W, scale)
    bias = jnp.zeros((c_out,), dtype=jnp.float32)
    return w_norm, bias, scale


def _reference(x, w_norm, bias, scale, stride, pad):
    y = jax.lax.conv_general_dilated(
        x * scale, w_norm,
        window_strides=(stride, stride),
        padding=((pad, pad), (pad, pad)),
        dimension_numbers=("NCHW", "OIHW", "NCHW"),
    ) + bias.reshape(1, -1, 1, 1)
    return y


def _run_case(key, *, N, c_in, c_out, k_size, stride, pad, H, W,
              compute_dtype=None, out_layout="NCHW", rtol=1e-5, atol=1e-5):
    kx, kw = jax.random.split(key)
    x = jax.random.normal(kx, (N, c_in, H, W), dtype=jnp.float32)
    w_norm, bias, scale = init_equalized_conv2d(kw, c_in, c_out, k_size)

    y = equalized_conv2d_forward(x, w_norm, bias, scale, stride=stride, pad=pad,
                                 compute_dtype=compute_dtype, out_layout=out_layout)
    y = jax.block_until_ready(y)

    ref = _reference(x, w_norm, bias, scale, stride, pad)
    if out_layout == "NHWC":
        ref = jnp.transpose(ref, (0, 2, 3, 1))
    np.testing.assert_allclose(np.asarray(y, dtype=np.float32), np.asarray(ref),
                               rtol=rtol, atol=atol)
    return y


if __name__ == "__main__":
    key = jax.random.PRNGKey(0)
    k1, k2, k3 = jax.random.split(key, 3)

    # Case 1: stride 1, "same" spatial size, f32 (exact path).
    y1 = _run_case(k1, N=2, c_in=4, c_out=8, k_size=3, stride=1, pad=1, H=16, W=16)
    assert y1.shape == (2, 8, 16, 16)

    # Case 2: stride 2 (exercises the strided im2col path), f32.
    y2 = _run_case(k2, N=2, c_in=4, c_out=8, k_size=3, stride=2, pad=1, H=16, W=16)
    assert y2.shape == (2, 8, 8, 8)

    # Case 3: bf16 MXU feeding + NHWC output (perf options), looser tolerance.
    y3 = _run_case(k3, N=2, c_in=4, c_out=8, k_size=3, stride=1, pad=1, H=16, W=16,
                   compute_dtype=jnp.bfloat16, out_layout="NHWC",
                   rtol=5e-2, atol=1e-1)
    assert y3.shape == (2, 16, 16, 8)

    print("KERNEL_OK")
</pallas_src>

<mosaic_0001>
module attributes {stable_mosaic.version = 11 : i64} {
  func.func @_gemm_bias_kernel(%arg0: i32, %arg1: i32, %arg2: i32, %arg3: memref<256x36xf32, #tpu.memory_space<vmem>>, %arg4: memref<36x128xf32, #tpu.memory_space<vmem>>, %arg5: memref<1x128xf32, #tpu.memory_space<vmem>>, %arg6: memref<256x128xf32, #tpu.memory_space<vmem>>) attributes {dimension_semantics = [#tpu.dimension_semantics<parallel>, #tpu.dimension_semantics<parallel>, #tpu.dimension_semantics<arbitrary>], iteration_bounds = array<i64: 2, 1, 1>, scalar_prefetch = 0 : i64, scratch_operands = 0 : i64, tpu.core_type = #tpu.core_type<tc>, window_params = [{transform_indices = @transform_0, window_bounds = array<i64: 256, 36>}, {transform_indices = @transform_1, window_bounds = array<i64: 36, 128>}, {transform_indices = @transform_2, window_bounds = array<i64: 1, 128>}, {transform_indices = @transform_3, window_bounds = array<i64: 256, 128>}]} {
    %c0 = arith.constant 0 : index
    %c0_0 = arith.constant 0 : index
    %0 = vector.load %arg3[%c0, %c0_0] : memref<256x36xf32, #tpu.memory_space<vmem>>, vector<256x36xf32>
    %c0_1 = arith.constant 0 : index
    %c0_2 = arith.constant 0 : index
    %1 = vector.load %arg4[%c0_1, %c0_2] : memref<36x128xf32, #tpu.memory_space<vmem>>, vector<36x128xf32>
    %cst = arith.constant dense<0.000000e+00> : vector<256x128xf32>
    %2 = tpu.matmul %0, %1, %cst {dimension_numbers = #tpu.dot_dimension_numbers<[1], [0], [0], [1], [0, 0, 1, 1], [], []>} : vector<256x36xf32>, vector<36x128xf32>, vector<256x128xf32> -> vector<256x128xf32>
    %c0_3 = arith.constant 0 : index
    %c0_4 = arith.constant 0 : index
    %3 = vector.load %arg5[%c0_3, %c0_4] : memref<1x128xf32, #tpu.memory_space<vmem>>, vector<1x128xf32>
    %4 = vector.broadcast %3 : vector<1x128xf32> to vector<256x128xf32>
    %5 = arith.addf %2, %4 : vector<256x128xf32>
    %c0_5 = arith.constant 0 : index
    %c0_6 = arith.constant 0 : index
    %6 = vector.load %arg6[%c0_5, %c0_6] : memref<256x128xf32, #tpu.memory_space<vmem>>, vector<256x128xf32>
    tpu.vector_store %arg6[%c0_5, %c0_6], %5 {strides = array<i32>} : memref<256x128xf32, #tpu.memory_space<vmem>>, vector<256x128xf32>,
    return
  }
  func.func @transform_0(%arg0: i32, %arg1: i32, %arg2: i32) -> (i32, i32) {
    %c0_i32 = arith.constant 0 : i32
    return %arg0, %arg2 : i32, i32
  }
  func.func @transform_1(%arg0: i32, %arg1: i32, %arg2: i32) -> (i32, i32) {
    %c0_i32 = arith.constant 0 : i32
    return %arg2, %arg1 : i32, i32
  }
  func.func @transform_2(%arg0: i32, %arg1: i32, %arg2: i32) -> (i32, i32) {
    %c0_i32 = arith.constant 0 : i32
    %c0_i32_0 = arith.constant 0 : i32
    return %c0_i32, %arg1 : i32, i32
  }
  func.func @transform_3(%arg0: i32, %arg1: i32, %arg2: i32) -> (i32, i32) {
    %c0_i32 = arith.constant 0 : i32
    return %arg0, %arg1 : i32, i32
  }
}

</mosaic_0001>

<bundles_post_ra>
// kernel: tpu_custom_call.1
= control target key start
LH: loop header
LB: loop body
LE: loop exit
PB: predicated region body
PF: predicated region fallthrough
CT: control target
= control target key end

     0   :  { %8 = vsyncpa [#allocation3], 0  ;;  %s1370_s0 = inlined_call_operand.vmem [shape: f32[512,36], index: 0, kind: input, shape index: {}]   ;;  %s1371_s1 = inlined_call_operand.vmem [shape: f32[36,128], index: 1, kind: input, shape index: {}]   ;;  %s1372_s2 = inlined_call_operand.vmem [shape: f32[1,128], index: 2, kind: input, shape index: {}]   ;;  %s1373_s3 = inlined_call_operand.hbm [shape: f32[512,128], index: 3, kind: output, shape index: {}]  }
   0x1   :  { %10 = vsyncpa [#allocation3 + $0x1], 0  ;;  %s1095_s12 = smov 0   ;;  %s1097_s13 = smov 0  }
   0x2   :  { %s1099_s14 = smov 0   ;;  %s1101_s15 = smov 0  }
   0x3   :  { %s1103_s16 = smov 0   ;;  %s1105_s17 = smov 0  }
   0x4 LB: > { %s776_s18 = sadd.s32 4294967295, %s1070_s17   ;;  %s777_s19 = sadd.s32 4294967294, %s1070_s17   ;;  %s1070_s17 = sphi %s1105_s17, %s16_s17   ;;  %s1066_s16 = sphi %s1103_s16, %s1380_s16   ;;  %s1062_s15 = sphi %s1101_s15, %s1379_s15   ;;  %s1058_s14 = sphi %s1099_s14, %s1378_s14   ;;  %s1054_s13 = sphi %s1097_s13, %s1377_s13   ;;  %s1050_s12 = sphi %s1095_s12, %s1376_s12  }
   0x5   : > { %s35_s20 = sadd.s32 1, %s1066_s16  ;;  %s126_s21 = sadd.s32 1, %s1058_s14 }
   0x6   : > { %p37_p0 = scmp.ge.s32.totalorder %s35_s20, 2  ;;  %p136_p1 = scmp.ne.s32.totalorder %s1058_s14, %s1054_s13 }
   0x7   : > { %p137_p2 = scmp.eq.s32.totalorder %s776_s18, 1  ;;  %p142_p3 = scmp.ne.s32.totalorder %s1054_s13, %s1050_s12 }
   0x8   : > { %s1382_s20 = smov (%p37_p0, %s35_s20), 0  ;;  %p143_p5 = scmp.eq.s32.totalorder %s777_s19, 1 }
   0x9   : > { %p1135_p4 = por %p137_p2, %p136_p1  ;;  %s121_s23 = ssub.s32 %s1066_s16, %s1382_s20 }
   0xa   : > { %p782_p6 = scmp.ge.s32.totalorder %s1070_s17, 1  ;;  %p124_p7 = scmp.eq.s32.totalorder %s121_s23, 0 }
   0xb   : > { %p1142_p8 = por %p143_p5, %p142_p3  ;;  %p191_p9 = scmp.lt.s32.totalorder %s1070_s17, 3 }
   0xc   : > { %s1148_s25 = scalar_select %p124_p7, %s1058_s14, %s126_s21  }
   0xd   : > { %p192_p10 = pnand %p782_p6, %p191_p9 }
   0xe   : > { %v283_v0 = vld [vmem:[%s1371_s1] sm:$0xff] (!%p192_p10)  ;;  %v284_v1 = vld [vmem:[%s1371_s1 + $0x8] sm:$0xff] (!%p192_p10)  ;;  %v285_v2 = vld [vmem:[%s1371_s1 + $0x10] sm:$0xff] (!%p192_p10)  ;;  %s784_s5 = sshll.u32 (!%p192_p10), %s1062_s15, 5  ;;  %vm392_vm0 = vcmask (!%p192_p10), 1043456   ;;  %vm295_vm1 = vcmask (!%p192_p10), 293888  }
   0xf   : > { %195 = sbr.rel (%p192_p10) target bundleno = 286 (0x11e), region = 32  ;;  %v921_v3 = vpack.c.bf16 (!%p192_p10), %v284_v1, %v283_v0  ;;  %v286_v4 = vld [vmem:[%s1371_s1 + $0x18] sm:$0xff] (!%p192_p10)  ;;  %p230_p11 = scmp.lt.s32.totalorder (!%p192_p10), %s784_s5, 63  ;;  %v287_v6 = vld [vmem:[%s1371_s1 + $0x20] sm:$0xf] (!%p192_p10) }
  0x10   : > { %v925_v5 = vpack.c.bf16 (!%p192_p10), %v286_v4, %v285_v2  ;;  %s226_s21 = sand.u32 (!%p192_p10), 1, %s1054_s13   ;;  %v1245_v39 = vld [vmem:[%s1372_s2] ss:$0 sm:$0xff] (!%p192_p10)  ;;  %s825_s29 = sshll.u32 (!%p192_p10), %s1062_s15, 12 }
  0x11   : > { %922 = vmatprep.subr.bf16.mxu0 (!%p192_p10), %v921_v3  ;;  %929 = vmatprep.subr.bf16.mxu1 (!%p192_p10), %v921_v3  ;;  %s783_s23 = sshll.u32 (!%p192_p10), %s226_s21, 8  ;;  %s1324_s6 = scalar_lea.sflag (!%p192_p10), [#allocation3], %s226_s21 }
  0x12   : > { %924 = vmatpush3.bf16.msra.mxu0 (!%p192_p10), %v921_v3  ;;  %932 = vmatpush3.bf16.msra.mxu1 (!%p192_p10), %v921_v3  ;;  %s1251_s28 = scalar_lea.vmem (!%p192_p10), [#allocation2], %s783_s23 }
  0x13   : > { %926 = vmatprep.subr.bf16.mxu0 (!%p192_p10), %v925_v5  ;;  %930 = vmatprep.subr.bf16.mxu1 (!%p192_p10), %v925_v5  ;;  %s668_s30 = sshll.u32 (!%p192_p10), %s1251_s28, 4  ;;  %s1314_s30 = int_to_ptr.vmem [resolvable:$true] %s668_s30 }
  0x14   : > { %s992_s7 = scalar_lea.vmem (!%p192_p10), %s1314_s30, 4096 }
  0x15   : > { %p993_p12 = scmp.ne.s32.totalorder (!%p192_p10), %s1314_s30, %s992_s7 }
  0x16   : > { %s1384_s5 = smov (!%p230_p11, %s784_s5), 63  ;;  %928 = vmatpush3.bf16.msra.mxu0 %v925_v5  ;;  %933 = vmatpush3.bf16.msra.mxu1 %v925_v5 }
  0x17   : > { %s785_s8 = sshll.u32 %s1384_s5, 3  ;;  %871 = vmatprep.subr.msk.mxu0 %vm392_vm0, %v287_v6  ;;  %931 = vmatprep.subr.msk.mxu1 %vm392_vm0, %v287_v6  ;;  %s1312_s5 = scalar_lea.hbm %s1373_s3, %s825_s29 }
  0x18   : > { %s1169_s19 = scalar_lea.vmem %s1370_s0, %s785_s8  ;;  %p994_p13 = pnand %p993_p12, %p1135_p4 }
  0x19   : > { %v251_v7 = vld [vmem:[%s1169_s19] sm:$0xff]  ;;  %v252_v9 = vld [vmem:[%s1169_s19 + $0x8] sm:$0xff]  ;;  %v253_v11 = vld [vmem:[%s1169_s19 + $0x10] sm:$0xff]  ;;  %s1072_s8 = smov [#allocation2]  }
  0x1a   : > { %v267_v8 = vld [vmem:[%s1169_s19 + $0x80] sm:$0xff]  ;;  %873 = vmatprep.mubr.msk.f32.mxu0 %vm295_vm1, %v251_v7  ;;  %v268_v10 = vld [vmem:[%s1169_s19 + $0x88] sm:$0xff]  ;;  %v269_v12 = vld [vmem:[%s1169_s19 + $0x90] sm:$0xff]  ;;  %872 = vmatpush3.msk.msra.mxu0 %vm392_vm0, %v287_v6  ;;  %p995_p0 = pneg %p994_p13  ;;  %s996_s9 = sshll.u32 %s1072_s8, 4  ;;  %s997_s9 = int_to_ptr.vmem [resolvable:$false] %s996_s9 }
  0x1b   : > { %897 = vmatprep.mubr.msk.f32.mxu1 %vm295_vm1, %v267_v8  ;;  %934 = vmatpush3.msk.msra.mxu1 %vm392_vm0, %v287_v6  ;;  %v254_v13 = vld [vmem:[%s1169_s19 + $0x18] sm:$0xff]  ;;  %v255_v15 = vld [vmem:[%s1169_s19 + $0x20] sm:$0xff]  ;;  %v256_v17 = vld [vmem:[%s1169_s19 + $0x28] sm:$0xff]  ;;  %s998_s10 = scalar_lea.vmem %s997_s9, 8192  ;;  %p999_p1 = scmp.lt.s32.totalorder %s1314_s30, %s997_s9 }
  0x1c   : > { %874 = vmatmul.mubr.msk.f32.vlgmr.msra.gmra.mrb[0].mxu0 %vm295_vm1, %v252_v9  ;;  %898 = vmatmul.mubr.msk.f32.vlgmr.msra.gmra.mrb[0].mxu1 %vm295_vm1, %v268_v10  ;;  %v270_v14 = vld [vmem:[%s1169_s19 + $0x98] sm:$0xff]  ;;  %v271_v16 = vld [vmem:[%s1169_s19 + $0xa0] sm:$0xff]  ;;  %v272_v18 = vld [vmem:[%s1169_s19 + $0xa8] sm:$0xff]  ;;  %p1000_p2 = scmp.lt.s32.totalorder %s998_s10, %s992_s7 }
  0x1d   : > { %876 = vmatprep.mubr.msk.f32.mxu0 %vm295_vm1, %v253_v11  ;;  %900 = vmatprep.mubr.msk.f32.mxu1 %vm295_vm1, %v269_v12  ;;  %v257_v19 = vld [vmem:[%s1169_s19 + $0x30] sm:$0xff]  ;;  %v258_v21 = vld [vmem:[%s1169_s19 + $0x38] sm:$0xff]  ;;  %v259_v23 = vld [vmem:[%s1169_s19 + $0x40] sm:$0xff] }
  0x1e   : > { %v273_v20 = vld [vmem:[%s1169_s19 + $0xb0] sm:$0xff]  ;;  %v274_v22 = vld [vmem:[%s1169_s19 + $0xb8] sm:$0xff]  ;;  %v275_v24 = vld [vmem:[%s1169_s19 + $0xc0] sm:$0xff]  ;;  %p1001_p3 = por %p1000_p2, %p999_p1 }
  0x1f   : > { %v260_v25 = vld [vmem:[%s1169_s19 + $0x48] sm:$0xff]  ;;  %v261_v27 = vld [vmem:[%s1169_s19 + $0x50] sm:$0xff]  ;;  %v262_v29 = vld [vmem:[%s1169_s19 + $0x58] sm:$0xff] }
  0x20   : > { %877 = vmatmul.mubr.msk.f32.gmra.mrb[2].mxu0 %vm295_vm1, %v254_v13  ;;  %901 = vmatmul.mubr.msk.f32.gmra.mrb[2].mxu1 %vm295_vm1, %v270_v14  ;;  %v276_v26 = vld [vmem:[%s1169_s19 + $0xc8] sm:$0xff]  ;;  %v277_v28 = vld [vmem:[%s1169_s19 + $0xd0] sm:$0xff]  ;;  %v278_v30 = vld [vmem:[%s1169_s19 + $0xd8] sm:$0xff]  ;;  %p1002_p5 = pnand %p1001_p3, %p995_p0 }
  0x21   : > { %879 = vmatprep.mubr.msk.f32.mxu0 %vm295_vm1, %v255_v15  ;;  %903 = vmatprep.mubr.msk.f32.mxu1 %vm295_vm1, %v271_v16  ;;  %v263_v31 = vld [vmem:[%s1169_s19 + $0x60] sm:$0xff]  ;;  %v264_v33 = vld [vmem:[%s1169_s19 + $0x68] sm:$0xff]  ;;  %v265_v35 = vld [vmem:[%s1169_s19 + $0x70] sm:$0xff] }
  0x22   : > { %v279_v32 = vld [vmem:[%s1169_s19 + $0xe0] sm:$0xff]  ;;  %v280_v34 = vld [vmem:[%s1169_s19 + $0xe8] sm:$0xff]  ;;  %v281_v36 = vld [vmem:[%s1169_s19 + $0xf0] sm:$0xff] }
  0x23   : > { %v266_v37 = vld [vmem:[%s1169_s19 + $0x78] sm:$0xff] }
  0x24   : > { %880 = vmatmul.mubr.msk.f32.gmra.mrb[4].mxu0 %vm295_vm1, %v256_v17  ;;  %904 = vmatmul.mubr.msk.f32.gmra.mrb[4].mxu1 %vm295_vm1, %v272_v18  ;;  %v282_v38 = vld [vmem:[%s1169_s19 + $0xf8] sm:$0xff] }
  0x25   : > { %882 = vmatprep.mubr.msk.f32.mxu0 %vm295_vm1, %v257_v19  ;;  %906 = vmatprep.mubr.msk.f32.mxu1 %vm295_vm1, %v273_v20 }
  0x28   : > { %883 = vmatmul.mubr.msk.f32.gmra.mrb[6].mxu0 %vm295_vm1, %v258_v21  ;;  %907 = vmatmul.mubr.msk.f32.gmra.mrb[6].mxu1 %vm295_vm1, %v274_v22 }
  0x29   : > { %885 = vmatprep.mubr.msk.f32.mxu0 %vm295_vm1, %v259_v23  ;;  %909 = vmatprep.mubr.msk.f32.mxu1 %vm295_vm1, %v275_v24 }
  0x2c   : > { %886 = vmatmul.mubr.msk.f32.gmra.mrb[8].mxu0 %vm295_vm1, %v260_v25  ;;  %910 = vmatmul.mubr.msk.f32.gmra.mrb[8].mxu1 %vm295_vm1, %v276_v26 }
  0x2d   : > { %888 = vmatprep.mubr.msk.f32.mxu0 %vm295_vm1, %v261_v27  ;;  %912 = vmatprep.mubr.msk.f32.mxu1 %vm295_vm1, %v277_v28 }
  0x30   : > { %889 = vmatmul.mubr.msk.f32.gmra.mrb[10].mxu0 %vm295_vm1, %v262_v29  ;;  %913 = vmatmul.mubr.msk.f32.gmra.mrb[10].mxu1 %vm295_vm1, %v278_v30 }
  0x31   : > { %891 = vmatprep.mubr.msk.f32.mxu0 %vm295_vm1, %v263_v31  ;;  %915 = vmatprep.mubr.msk.f32.mxu1 %vm295_vm1, %v279_v32 }
  0x34   : > { %892 = vmatmul.mubr.msk.f32.gmra.mrb[12].mxu0 %vm295_vm1, %v264_v33  ;;  %916 = vmatmul.mubr.msk.f32.gmra.mrb[12].mxu1 %vm295_vm1, %v280_v34 }
  0x35   : > { %894 = vmatprep.mubr.msk.f32.mxu0 %vm295_vm1, %v265_v35  ;;  %918 = vmatprep.mubr.msk.f32.mxu1 %vm295_vm1, %v281_v36 }
  0x38   : > { %895 = vmatmul.mubr.msk.f32.gmra.mrb[14].mxu0 %vm295_vm1, %v266_v37  ;;  %919 = vmatmul.mubr.msk.f32.gmra.mrb[14].mxu1 %vm295_vm1, %v282_v38 }
  0xef   : > { %v875_v40 = vpop.f32.mrb[0].mxu0  ;;  %v899_v41 = vpop.f32.mrb[0].mxu1 }
  0xf0   : > { %v468_v42 = vadd.f32 %v875_v40, %v1245_v39  ;;  %v548_v43 = vadd.f32 %v899_v41, %v1245_v39  ;;  %v462_v44 = vpop.f32.mrb[1].mxu0  ;;  %v542_v45 = vpop.f32.mrb[1].mxu1 }
  0xf1   : > { %v463_v46 = vadd.f32 %v1245_v39, %v462_v44  ;;  %v543_v47 = vadd.f32 %v1245_v39, %v542_v45 }
  0xf2   : > { %622 = vst [vmem:[%s1251_s28 + $0x8] sm:$0xff] %v468_v42  ;;  %638 = vst [vmem:[%s1251_s28 + $0x88] sm:$0xff] %v548_v43 }
  0xf3   : > { %621 = vst [vmem:[%s1251_s28] sm:$0xff] %v463_v46  ;;  %637 = vst [vmem:[%s1251_s28 + $0x80] sm:$0xff] %v543_v47  ;;  %v878_v48 = vpop.f32.mrb[2].mxu0  ;;  %v902_v49 = vpop.f32.mrb[2].mxu1 }
  0xf4   : > { %v478_v50 = vadd.f32 %v878_v48, %v1245_v39  ;;  %v558_v51 = vadd.f32 %v902_v49, %v1245_v39  ;;  %v472_v52 = vpop.f32.mrb[3].mxu0  ;;  %v552_v53 = vpop.f32.mrb[3].mxu1 }
  0xf5   : > { %v473_v54 = vadd.f32 %v1245_v39, %v472_v52  ;;  %v553_v55 = vadd.f32 %v1245_v39, %v552_v53 }
  0xf6   : > { %624 = vst [vmem:[%s1251_s28 + $0x18] sm:$0xff] %v478_v50  ;;  %640 = vst [vmem:[%s1251_s28 + $0x98] sm:$0xff] %v558_v51 }
  0xf7   : > { %623 = vst [vmem:[%s1251_s28 + $0x10] sm:$0xff] %v473_v54  ;;  %639 = vst [vmem:[%s1251_s28 + $0x90] sm:$0xff] %v553_v55  ;;  %v881_v56 = vpop.f32.mrb[4].mxu0  ;;  %v905_v57 = vpop.f32.mrb[4].mxu1 }
  0xf8   : > { %v488_v58 = vadd.f32 %v881_v56, %v1245_v39  ;;  %v568_v59 = vadd.f32 %v905_v57, %v1245_v39  ;;  %v482_v60 = vpop.f32.mrb[5].mxu0  ;;  %v562_v61 = vpop.f32.mrb[5].mxu1 }
  0xf9   : > { %v483_v62 = vadd.f32 %v1245_v39, %v482_v60  ;;  %v563_v63 = vadd.f32 %v1245_v39, %v562_v61 }
  0xfa   : > { %626 = vst [vmem:[%s1251_s28 + $0x28] sm:$0xff] %v488_v58  ;;  %642 = vst [vmem:[%s1251_s28 + $0xa8] sm:$0xff] %v568_v59 }
  0xfb   : > { %625 = vst [vmem:[%s1251_s28 + $0x20] sm:$0xff] %v483_v62  ;;  %641 = vst [vmem:[%s1251_s28 + $0xa0] sm:$0xff] %v563_v63  ;;  %v884_v0 = vpop.f32.mrb[6].mxu0  ;;  %v908_v1 = vpop.f32.mrb[6].mxu1 }
  0xfc   : > { %v498_v2 = vadd.f32 %v884_v0, %v1245_v39  ;;  %v578_v3 = vadd.f32 %v908_v1, %v1245_v39  ;;  %v492_v4 = vpop.f32.mrb[7].mxu0  ;;  %v572_v5 = vpop.f32.mrb[7].mxu1 }
  0xfd   : > { %v493_v6 = vadd.f32 %v1245_v39, %v492_v4  ;;  %v573_v7 = vadd.f32 %v1245_v39, %v572_v5 }
  0xfe   : > { %628 = vst [vmem:[%s1251_s28 + $0x38] sm:$0xff] %v498_v2  ;;  %644 = vst [vmem:[%s1251_s28 + $0xb8] sm:$0xff] %v578_v3 }
  0xff   : > { %627 = vst [vmem:[%s1251_s28 + $0x30] sm:$0xff] %v493_v6  ;;  %643 = vst [vmem:[%s1251_s28 + $0xb0] sm:$0xff] %v573_v7  ;;  %v887_v8 = vpop.f32.mrb[8].mxu0  ;;  %v911_v9 = vpop.f32.mrb[8].mxu1 }
 0x100   : > { %v508_v10 = vadd.f32 %v887_v8, %v1245_v39  ;;  %v588_v11 = vadd.f32 %v911_v9, %v1245_v39  ;;  %v502_v12 = vpop.f32.mrb[9].mxu0  ;;  %v582_v13 = vpop.f32.mrb[9].mxu1 }
 0x101   : > { %v503_v14 = vadd.f32 %v1245_v39, %v502_v12  ;;  %v583_v15 = vadd.f32 %v1245_v39, %v582_v13 }
 0x102   : > { %630 = vst [vmem:[%s1251_s28 + $0x48] sm:$0xff] %v508_v10  ;;  %646 = vst [vmem:[%s1251_s28 + $0xc8] sm:$0xff] %v588_v11 }
 0x103   : > { %629 = vst [vmem:[%s1251_s28 + $0x40] sm:$0xff] %v503_v14  ;;  %645 = vst [vmem:[%s1251_s28 + $0xc0] sm:$0xff] %v583_v15  ;;  %v890_v16 = vpop.f32.mrb[10].mxu0  ;;  %v914_v17 = vpop.f32.mrb[10].mxu1 }
 0x104   : > { %v518_v18 = vadd.f32 %v890_v16, %v1245_v39  ;;  %v598_v19 = vadd.f32 %v914_v17, %v1245_v39  ;;  %v512_v20 = vpop.f32.mrb[11].mxu0  ;;  %v592_v21 = vpop.f32.mrb[11].mxu1 }
 0x105   : > { %v513_v22 = vadd.f32 %v1245_v39, %v512_v20  ;;  %v593_v23 = vadd.f32 %v1245_v39, %v592_v21 }
 0x106   : > { %632 = vst [vmem:[%s1251_s28 + $0x58] sm:$0xff] %v518_v18  ;;  %648 = vst [vmem:[%s1251_s28 + $0xd8] sm:$0xff] %v598_v19 }
 0x107   : > { %631 = vst [vmem:[%s1251_s28 + $0x50] sm:$0xff] %v513_v22  ;;  %647 = vst [vmem:[%s1251_s28 + $0xd0] sm:$0xff] %v593_v23  ;;  %v893_v24 = vpop.f32.mrb[12].mxu0  ;;  %v917_v25 = vpop.f32.mrb[12].mxu1 }
 0x108   : > { %v528_v26 = vadd.f32 %v893_v24, %v1245_v39  ;;  %v608_v27 = vadd.f32 %v917_v25, %v1245_v39  ;;  %v522_v28 = vpop.f32.mrb[13].mxu0  ;;  %v602_v29 = vpop.f32.mrb[13].mxu1 }
 0x109   : > { %v523_v30 = vadd.f32 %v1245_v39, %v522_v28  ;;  %v603_v31 = vadd.f32 %v1245_v39, %v602_v29 }
 0x10a   : > { %634 = vst [vmem:[%s1251_s28 + $0x68] sm:$0xff] %v528_v26  ;;  %650 = vst [vmem:[%s1251_s28 + $0xe8] sm:$0xff] %v608_v27 }
 0x10b   : > { %633 = vst [vmem:[%s1251_s28 + $0x60] sm:$0xff] %v523_v30  ;;  %649 = vst [vmem:[%s1251_s28 + $0xe0] sm:$0xff] %v603_v31  ;;  %v896_v32 = vpop.f32.mrb[14].mxu0  ;;  %v920_v33 = vpop.f32.mrb[14].mxu1 }
 0x10c   : > { %v538_v34 = vadd.f32 %v896_v32, %v1245_v39  ;;  %v618_v35 = vadd.f32 %v920_v33, %v1245_v39  ;;  %v532_v36 = vpop.f32.mrb[15].mxu0  ;;  %v612_v37 = vpop.f32.mrb[15].mxu1 }
 0x10d   : > { %v533_v38 = vadd.f32 %v1245_v39, %v532_v36  ;;  %v613_v40 = vadd.f32 %v1245_v39, %v612_v37 }
 0x10e   : > { %636 = vst [vmem:[%s1251_s28 + $0x78] sm:$0xff] %v538_v34  ;;  %652 = vst [vmem:[%s1251_s28 + $0xf8] sm:$0xff] %v618_v35 }
 0x10f   : > { %635 = vst [vmem:[%s1251_s28 + $0x70] sm:$0xff] %v533_v38  ;;  %651 = vst [vmem:[%s1251_s28 + $0xf0] sm:$0xff] %v613_v40 }
 0x110   : > { %1005 = shalt.err (!%p1002_p5)
}
 0x111   : > { %s1006_s11 = scalar_lea.hbm %s1312_s5, 4096  ;;  %s1010_s21 = scalar_lea.hbm %s1373_s3, 8192 }
 0x112   : > { %p1007_p6 = scmp.ne.s32.totalorder %s1312_s5, %s1006_s11  ;;  %p1011_p10 = scmp.lt.u32.totalorder %s1312_s5, %s1373_s3 }
 0x113   : > { %p1012_p11 = scmp.lt.u32.totalorder %s1010_s21, %s1006_s11  ;;  %p1014_p13 = scmp.lt.u32.totalorder %s1006_s11, %s1312_s5 }
 0x114   : > { %p1008_p7 = pnand %p1007_p6, %p1135_p4 }
 0x115   : > { %p1013_p12 = por %p1012_p11, %p1011_p10 }
 0x116   : > { %p1009_p9 = pneg %p1008_p7 }
 0x117   : > { %p1015_p0 = por %p1014_p13, %p1013_p12 }
 0x119   : > { %p1016_p1 = pnand %p1015_p0, %p1009_p9 }
 0x11b   : > { %1019 = shalt.err (!%p1016_p1)
}
 0x11c   : > { %s1073_s27 = smov 128   ;;  %s1074_s28 = smov 8  }
 0x11d   : > { %935 = dma.vmem_to_hbm [thread:$0]  (%p1135_p4), %s1314_s30, 4096, %s1312_s5, %s1324_s6, %s1073_s27, %s1073_s27, %s1074_s28  }
 0x11e PF: > { %p941_p2 = scmp.ge.s32.totalorder %s1070_s17, 2  ;;  %s683_s29 = sand.u32 1, %s1050_s12  }
 0x11f   : > { %s684_s15 = scalar_lea.sflag [#allocation3], %s683_s29 }
 0x120   : > { %p938_p3 = pnand %p941_p2, %p1142_p8 }
 0x122   : > { %1045 = dma.done.wait (!%p938_p3), %s684_s15, 4096  }
 0x123   : > { %1047 = vsyncadd (!%p938_p3), %s684_s15, 4294963200  ;;  %s16_s17 = sadd.s32 1, %s1070_s17   ;;  %s1376_s12 = smov %s1054_s13 }
 0x124   : > { %p13_p5 = scmp.ge.s32.totalorder %s16_s17, 4   ;;  %s1377_s13 = smov %s1058_s14 }
 0x125   : > { %s1378_s14 = smov %s1148_s25  ;;  %s1379_s15 = smov %s1066_s16 }
 0x126   : > { %s1380_s16 = smov %s1382_s20  ;;  %15 = sbr.rel (!%p13_p5) target bundleno = 4 (0x4), region = 73 }
 0x12d   :  { %689 = vsyncpa [#allocation3], 1 }
 0x12e   :  { %691 = vsyncpa [#allocation3 + $0x1], 1 }

</bundles_post_ra>
